<compile_context>
chip_gen: v7x
topology: tpu7x:2x2x1
jax: 0.10.0
libtpu: 0.0.40
codegen_flags: <defaults>
</compile_context>

<pallas_src>
import jax
import jax.numpy as jnp
from jax import lax
from jax.experimental import pallas as pl
from jax.experimental.pallas import tpu as pltpu


def _round_up(x, m):
    return (x + m - 1) // m * m


def _cdiv(a, b):
    return -(-a // b)


def _make_kernel(embed_dim, eps):
    inv_e = 1.0 / float(embed_dim)

    def kernel(x_ref, w_ref, b_ref, beta_ref, ssum_ref, sbc_ref, sbcg_ref, o_ref):
        # x_ref:    (TMf, F*K)  folded patches, F patches per row  (compute dtype)
        # w_ref:    (F*K, F*E)  block-diagonal projection weight   (compute dtype)
        # b_ref:    (1,  F*E)   conv bias tiled F times            (f32)
        # beta_ref: (1,  F*E)   LN beta tiled F times              (f32)
        # ssum_ref: (F*E, F)    per-patch segment-sum matrix       (f32)
        # sbc_ref:  (F,  F*E)   per-patch broadcast-back matrix    (f32)
        # sbcg_ref: (F,  F*E)   broadcast-back matrix * LN gamma   (f32)
        # o_ref:    (TMf, F*E)  lane-dense output (F*E = multiple of 128)
        y = jnp.dot(x_ref[...], w_ref[...], preferred_element_type=jnp.float32)
        y = y + b_ref[...]

        # Centered two-pass LayerNorm statistics, f32 throughout.  All per-patch
        # reductions / broadcasts over the folded lane layout are tiny MXU
        # matmuls (segment-sum / broadcast matrices) -> no in-kernel reshapes.
        ssum = ssum_ref[...]
        mean = jnp.dot(y, ssum, preferred_element_type=jnp.float32) * inv_e      # (TMf, F)
        yc = y - jnp.dot(mean, sbc_ref[...], preferred_element_type=jnp.float32)  # centered
        var = jnp.dot(yc * yc, ssum, preferred_element_type=jnp.float32) * inv_e  # (TMf, F)
        rstd = lax.rsqrt(var + eps)                                                # (TMf, F)

        # gamma folded into the broadcast matrix; beta is a plain add.
        scale = jnp.dot(rstd, sbcg_ref[...], preferred_element_type=jnp.float32)  # (TMf, F*E)
        o_ref[...] = (yc * scale + beta_ref[...]).astype(o_ref.dtype)

    return kernel


def patch_embed(x_nchw, conv_w, conv_b, ln_g, ln_b, *, patch_size=(3, 2),
                fold=8, tile_patches=16384, eps=1e-5,
                compute_dtype=jnp.bfloat16, out_dtype=None):
    """x_nchw: (B, C, H, W); conv_w: (E, C, ph, pw); conv_b/ln_g/ln_b: (E,).

    Returns (B, Hp*Wp, E) matching PatchEmbed.forward (proj -> rearrange -> LN).

    `compute_dtype` is the dtype of the streamed patches / projection weight
    (stats stay f32); `out_dtype` defaults to the input dtype.  `fold` folds
    that many patches per kernel row so the store lane width is fold*E
    (lane-dense, multiple of 128 for E=48, fold=8).  Keep fold=8 on v5e; 16 is
    fine on v6e/v7x (MXU slack vs HBM).
    """
    B, C, H, W = x_nchw.shape
    E = conv_w.shape[0]
    ph, pw = patch_size
    assert H % ph == 0 and W % pw == 0
    assert tile_patches >= 256 and 256 % fold == 0
    Hp, Wp = H // ph, W // pw
    N = Hp * Wp
    K = C * ph * pw
    M = B * N
    F = fold
    in_dt = compute_dtype if compute_dtype is not None else x_nchw.dtype
    out_dt = out_dtype if out_dtype is not None else x_nchw.dtype

    # --- tile / grid selection -------------------------------------------------
    # Large steady-state tiles (amortize the ~0.35 us/step pipeline overhead),
    # but always an even number of grid steps (>= 2) when M > 256 so both v7x
    # TensorCores get work under dimension_semantics=("parallel",).
    M256 = _round_up(M, 256)
    steps = max(1, _cdiv(M256, min(tile_patches, M256)))
    if steps % 2 == 1 and M256 > 256:
        steps += 1
    TM = _round_up(_cdiv(M256, steps), 256)       # patches per grid step
    M_pad = TM * steps
    TMf = TM // F
    grid = (steps,)

    # --- model-boundary glue: patchify (one XLA rearrange) ----------------------
    # Cast first so the materialized (M, K) im2col intermediate is `compute_dtype`
    # (half the extra HBM round trip at bf16).  See module-level TODO(synk).
    patches = x_nchw.astype(in_dt).reshape(B, C, Hp, ph, Wp, pw)
    patches = patches.transpose(0, 2, 4, 1, 3, 5).reshape(M, K)   # (M, K), k = (c,dh,dw)
    if M_pad != M:
        # NOTE: padded tail rows see var = 0 -> rstd ~ 1/sqrt(eps) ~ 316; they
        # produce large-but-finite garbage that is sliced off below.  Never read
        # the padded region.
        patches = jnp.pad(patches, ((0, M_pad - M), (0, 0)))
    x_fold = patches.reshape(M_pad // F, F * K)   # pure reshape: fold F patches/row

    f32 = jnp.float32
    w_mat = conv_w.reshape(E, K).T.astype(f32)                      # (K, E)
    w_bd = jnp.kron(jnp.eye(F, dtype=f32), w_mat).astype(in_dt)     # (F*K, F*E)
    b_t = jnp.tile(conv_b.astype(f32).reshape(1, E), (1, F))        # (1, F*E)
    beta_t = jnp.tile(ln_b.astype(f32).reshape(1, E), (1, F))       # (1, F*E)
    g_t = jnp.tile(ln_g.astype(f32).reshape(1, E), (1, F))          # (1, F*E)
    ssum = jnp.kron(jnp.eye(F, dtype=f32), jnp.ones((E, 1), f32))   # (F*E, F)
    sbc = ssum.T                                                    # (F, F*E)
    sbc_g = sbc * g_t                                               # gamma folded in

    kernel = _make_kernel(E, eps)

    in_bytes = jnp.dtype(in_dt).itemsize
    out_bytes = jnp.dtype(out_dt).itemsize
    cost = pl.CostEstimate(
        # Block-diagonal matmul actually issued + the 4 small stat matmuls.
        flops=2 * M_pad * F * E * (K + 4),
        transcendentals=M_pad,                    # one rsqrt per patch
        bytes_accessed=(in_bytes * (M_pad * K + (F * K) * (F * E))
                        + out_bytes * M_pad * E
                        + 4 * (2 * F * E + 3 * F * F * E)),
    )

    out_fold = pl.pallas_call(
        kernel,
        out_shape=jax.ShapeDtypeStruct((M_pad // F, F * E), out_dt),
        grid=grid,
        in_specs=[
            pl.BlockSpec((TMf, F * K), lambda i: (i, 0)),     # folded patches (streamed)
            pl.BlockSpec((F * K, F * E), lambda i: (0, 0)),   # weight: VMEM-resident
            pl.BlockSpec((1, F * E), lambda i: (0, 0)),       # conv bias
            pl.BlockSpec((1, F * E), lambda i: (0, 0)),       # LN beta
            pl.BlockSpec((F * E, F), lambda i: (0, 0)),       # segment-sum matrix
            pl.BlockSpec((F, F * E), lambda i: (0, 0)),       # broadcast-back matrix
            pl.BlockSpec((F, F * E), lambda i: (0, 0)),       # broadcast-back * gamma
        ],
        out_specs=pl.BlockSpec((TMf, F * E), lambda i: (i, 0)),
        compiler_params=pltpu.CompilerParams(
            dimension_semantics=("parallel",),                # shard M across v7x TCs
            vmem_limit_bytes=32 * 1024 * 1024,                # load-bearing on v5e (16 MiB default)
            allow_input_fusion=[True, False, False, False, False, False, False],
        ),
        cost_estimate=cost,
    )(x_fold, w_bd, b_t, beta_t, ssum, sbc, sbc_g)

    out = out_fold.reshape(M_pad, E)[:M]                      # unfold + drop padded tail
    return out.reshape(B, N, E)                               # b (h w) c


def _reference(x_nchw, conv_w, conv_b, ln_g, ln_b, patch_size=(3, 2)):
    """Pure-JAX reference (conv + rearrange + layernorm) for validation."""
    y = lax.conv_general_dilated(
        x_nchw, conv_w, window_strides=patch_size, padding="VALID",
        dimension_numbers=("NCHW", "OIHW", "NCHW"),
    ) + conv_b[None, :, None, None]
    B, E, Hp, Wp = y.shape
    y = y.transpose(0, 2, 3, 1).reshape(B, Hp * Wp, E)
    mean = jnp.mean(y, axis=-1, keepdims=True)
    var = jnp.mean((y - mean) ** 2, axis=-1, keepdims=True)
    yn = (y - mean) * lax.rsqrt(var + 1e-5)
    return yn * ln_g + ln_b


if __name__ == "__main__":
    # Small shapes consistent with the module: in_chans=2, patch=(3,2), embed=48.
    B, C, H, W = 2, 2, 48, 32
    E = 48
    ph, pw = 3, 2

    key = jax.random.PRNGKey(0)
    k1, k2, k3, k4, k5 = jax.random.split(key, 5)
    x = jax.random.normal(k1, (B, C, H, W), dtype=jnp.float32)
    conv_w = jax.random.normal(k2, (E, C, ph, pw), dtype=jnp.float32) * 0.1
    conv_b = jax.random.normal(k3, (E,), dtype=jnp.float32) * 0.1
    ln_g = 1.0 + 0.1 * jax.random.normal(k4, (E,), dtype=jnp.float32)
    ln_b = 0.1 * jax.random.normal(k5, (E,), dtype=jnp.float32)

    ref = _reference(x, conv_w, conv_b, ln_g, ln_b, patch_size=(ph, pw))
    expected_shape = (B, (H // ph) * (W // pw), E)

    # 1) Strict-precision path (f32 streams): exact-semantics check.
    #    M=512 -> the tile logic picks TM=256, grid=(2,), exercising a
    #    multi-step pipelined launch and the v7x even-split path.
    out_f32 = jax.block_until_ready(
        patch_embed(x, conv_w, conv_b, ln_g, ln_b, patch_size=(ph, pw),
                    compute_dtype=jnp.float32))
    assert out_f32.shape == expected_shape
    assert jnp.allclose(out_f32, ref, atol=1e-4, rtol=1e-4), \
        float(jnp.max(jnp.abs(out_f32 - ref)))

    # 2) Default optimized path (bf16 patch/weight streams, f32 stats/output).
    out_bf16 = jax.block_until_ready(
        patch_embed(x, conv_w, conv_b, ln_g, ln_b, patch_size=(ph, pw)))
    assert out_bf16.shape == expected_shape
    assert jnp.allclose(out_bf16, ref, atol=5e-2, rtol=5e-2), \
        float(jnp.max(jnp.abs(out_bf16 - ref)))

    print("KERNEL_OK")
</pallas_src>

<mosaic_0001>
module attributes {stable_mosaic.version = 11 : i64} {
  func.func @kernel(%arg0: i32, %arg1: memref<32x96xf32, #tpu.memory_space<vmem>>, %arg2: memref<96x384xf32, #tpu.memory_space<vmem>>, %arg3: memref<1x384xf32, #tpu.memory_space<vmem>>, %arg4: memref<1x384xf32, #tpu.memory_space<vmem>>, %arg5: memref<384x8xf32, #tpu.memory_space<vmem>>, %arg6: memref<8x384xf32, #tpu.memory_space<vmem>>, %arg7: memref<8x384xf32, #tpu.memory_space<vmem>>, %arg8: memref<32x384xf32, #tpu.memory_space<vmem>>) attributes {dimension_semantics = [#tpu.dimension_semantics<parallel>], iteration_bounds = array<i64: 2>, scalar_prefetch = 0 : i64, scratch_operands = 0 : i64, tpu.core_type = #tpu.core_type<tc>, window_params = [{transform_indices = @transform_0, window_bounds = array<i64: 32, 96>}, {pipeline_mode = #tpu.pipeline_mode<synchronous>, transform_indices = @transform_1, window_bounds = array<i64: 96, 384>}, {pipeline_mode = #tpu.pipeline_mode<synchronous>, transform_indices = @transform_2, window_bounds = array<i64: 1, 384>}, {pipeline_mode = #tpu.pipeline_mode<synchronous>, transform_indices = @transform_3, window_bounds = array<i64: 1, 384>}, {pipeline_mode = #tpu.pipeline_mode<synchronous>, transform_indices = @transform_4, window_bounds = array<i64: 384, 8>}, {pipeline_mode = #tpu.pipeline_mode<synchronous>, transform_indices = @transform_5, window_bounds = array<i64: 8, 384>}, {pipeline_mode = #tpu.pipeline_mode<synchronous>, transform_indices = @transform_6, window_bounds = array<i64: 8, 384>}, {transform_indices = @transform_7, window_bounds = array<i64: 32, 384>}]} {
    %c0 = arith.constant 0 : index
    %c0_0 = arith.constant 0 : index
    %0 = vector.load %arg1[%c0, %c0_0] : memref<32x96xf32, #tpu.memory_space<vmem>>, vector<32x96xf32>
    %c0_1 = arith.constant 0 : index
    %c0_2 = arith.constant 0 : index
    %1 = vector.load %arg2[%c0_1, %c0_2] : memref<96x384xf32, #tpu.memory_space<vmem>>, vector<96x384xf32>
    %cst = arith.constant dense<0.000000e+00> : vector<32x384xf32>
    %2 = tpu.matmul %0, %1, %cst {dimension_numbers = #tpu.dot_dimension_numbers<[1], [0], [0], [1], [0, 0, 1, 1], [], []>} : vector<32x96xf32>, vector<96x384xf32>, vector<32x384xf32> -> vector<32x384xf32>
    %c0_3 = arith.constant 0 : index
    %c0_4 = arith.constant 0 : index
    %3 = vector.load %arg3[%c0_3, %c0_4] : memref<1x384xf32, #tpu.memory_space<vmem>>, vector<1x384xf32>
    %4 = vector.broadcast %3 : vector<1x384xf32> to vector<32x384xf32>
    %5 = arith.addf %2, %4 : vector<32x384xf32>
    %c0_5 = arith.constant 0 : index
    %c0_6 = arith.constant 0 : index
    %6 = vector.load %arg5[%c0_5, %c0_6] : memref<384x8xf32, #tpu.memory_space<vmem>>, vector<384x8xf32>
    %cst_7 = arith.constant dense<0.000000e+00> : vector<32x8xf32>
    %7 = tpu.matmul %5, %6, %cst_7 {dimension_numbers = #tpu.dot_dimension_numbers<[1], [0], [0], [1], [0, 0, 1, 1], [], []>} : vector<32x384xf32>, vector<384x8xf32>, vector<32x8xf32> -> vector<32x8xf32>
    %cst_8 = arith.constant 0.020833334 : f32
    %8 = vector.broadcast %cst_8 : f32 to vector<32x8xf32>
    %9 = arith.mulf %7, %8 : vector<32x8xf32>
    %c0_9 = arith.constant 0 : index
    %c0_10 = arith.constant 0 : index
    %10 = vector.load %arg6[%c0_9, %c0_10] : memref<8x384xf32, #tpu.memory_space<vmem>>, vector<8x384xf32>
    %cst_11 = arith.constant dense<0.000000e+00> : vector<32x384xf32>
    %11 = tpu.matmul %9, %10, %cst_11 {dimension_numbers = #tpu.dot_dimension_numbers<[1], [0], [0], [1], [0, 0, 1, 1], [], []>} : vector<32x8xf32>, vector<8x384xf32>, vector<32x384xf32> -> vector<32x384xf32>
    %12 = arith.subf %5, %11 : vector<32x384xf32>
    %13 = arith.mulf %12, %12 : vector<32x384xf32>
    %cst_12 = arith.constant dense<0.000000e+00> : vector<32x8xf32>
    %14 = tpu.matmul %13, %6, %cst_12 {dimension_numbers = #tpu.dot_dimension_numbers<[1], [0], [0], [1], [0, 0, 1, 1], [], []>} : vector<32x384xf32>, vector<384x8xf32>, vector<32x8xf32> -> vector<32x8xf32>
    %cst_13 = arith.constant 0.020833334 : f32
    %15 = vector.broadcast %cst_13 : f32 to vector<32x8xf32>
    %16 = arith.mulf %14, %15 : vector<32x8xf32>
    %cst_14 = arith.constant 9.99999974E-6 : f32
    %17 = vector.broadcast %cst_14 : f32 to vector<32x8xf32>
    %18 = arith.addf %16, %17 : vector<32x8xf32>
    %19 = math.rsqrt %18 : vector<32x8xf32>
    %c0_15 = arith.constant 0 : index
    %c0_16 = arith.constant 0 : index
    %20 = vector.load %arg7[%c0_15, %c0_16] : memref<8x384xf32, #tpu.memory_space<vmem>>, vector<8x384xf32>
    %cst_17 = arith.constant dense<0.000000e+00> : vector<32x384xf32>
    %21 = tpu.matmul %19, %20, %cst_17 {dimension_numbers = #tpu.dot_dimension_numbers<[1], [0], [0], [1], [0, 0, 1, 1], [], []>} : vector<32x8xf32>, vector<8x384xf32>, vector<32x384xf32> -> vector<32x384xf32>
    %22 = arith.mulf %12, %21 : vector<32x384xf32>
    %c0_18 = arith.constant 0 : index
    %c0_19 = arith.constant 0 : index
    %23 = vector.load %arg4[%c0_18, %c0_19] : memref<1x384xf32, #tpu.memory_space<vmem>>, vector<1x384xf32>
    %24 = vector.broadcast %23 : vector<1x384xf32> to vector<32x384xf32>
    %25 = arith.addf %22, %24 : vector<32x384xf32>
    %c0_20 = arith.constant 0 : index
    %c0_21 = arith.constant 0 : index
    %26 = vector.load %arg8[%c0_20, %c0_21] : memref<32x384xf32, #tpu.memory_space<vmem>>, vector<32x384xf32>
    tpu.vector_store %arg8[%c0_20, %c0_21], %25 {strides = array<i32>} : memref<32x384xf32, #tpu.memory_space<vmem>>, vector<32x384xf32>,
    return
  }
  func.func @transform_0(%arg0: i32) -> (i32, i32) {
    %c0_i32 = arith.constant 0 : i32
    %c0_i32_0 = arith.constant 0 : i32
    return %arg0, %c0_i32 : i32, i32
  }
  func.func @transform_1(%arg0: i32) -> (i32, i32) {
    %c0_i32 = arith.constant 0 : i32
    %c0_i32_0 = arith.constant 0 : i32
    %c0_i32_1 = arith.constant 0 : i32
    return %c0_i32, %c0_i32_0 : i32, i32
  }
  func.func @transform_2(%arg0: i32) -> (i32, i32) {
    %c0_i32 = arith.constant 0 : i32
    %c0_i32_0 = arith.constant 0 : i32
    %c0_i32_1 = arith.constant 0 : i32
    return %c0_i32, %c0_i32_0 : i32, i32
  }
  func.func @transform_3(%arg0: i32) -> (i32, i32) {
    %c0_i32 = arith.constant 0 : i32
    %c0_i32_0 = arith.constant 0 : i32
    %c0_i32_1 = arith.constant 0 : i32
    return %c0_i32, %c0_i32_0 : i32, i32
  }
  func.func @transform_4(%arg0: i32) -> (i32, i32) {
    %c0_i32 = arith.constant 0 : i32
    %c0_i32_0 = arith.constant 0 : i32
    %c0_i32_1 = arith.constant 0 : i32
    return %c0_i32, %c0_i32_0 : i32, i32
  }
  func.func @transform_5(%arg0: i32) -> (i32, i32) {
    %c0_i32 = arith.constant 0 : i32
    %c0_i32_0 = arith.constant 0 : i32
    %c0_i32_1 = arith.constant 0 : i32
    return %c0_i32, %c0_i32_0 : i32, i32
  }
  func.func @transform_6(%arg0: i32) -> (i32, i32) {
    %c0_i32 = arith.constant 0 : i32
    %c0_i32_0 = arith.constant 0 : i32
    %c0_i32_1 = arith.constant 0 : i32
    return %c0_i32, %c0_i32_0 : i32, i32
  }
  func.func @transform_7(%arg0: i32) -> (i32, i32) {
    %c0_i32 = arith.constant 0 : i32
    %c0_i32_0 = arith.constant 0 : i32
    return %arg0, %c0_i32 : i32, i32
  }
}

</mosaic_0001>

<bundles_post_ra>
// kernel: tpu_custom_call.1
= control target key start
LH: loop header
LB: loop body
LE: loop exit
PB: predicated region body
PF: predicated region fallthrough
CT: control target
= control target key end

     0   :  { %12 = vsyncpa [#allocation3], 0  ;;  %s2789_s0 = inlined_call_operand.vmem [shape: f32[64,96], index: 0, kind: input, shape index: {}]   ;;  %s2790_s1 = inlined_call_operand.vmem [shape: f32[96,384], index: 1, kind: input, shape index: {}]   ;;  %s2791_s2 = inlined_call_operand.vmem [shape: f32[1,384], index: 2, kind: input, shape index: {}]   ;;  %s2792_s3 = inlined_call_operand.vmem [shape: f32[1,384], index: 3, kind: input, shape index: {}]   ;;  %s2793_s4 = inlined_call_operand.vmem [shape: f32[384,8], index: 4, kind: input, shape index: {}]   ;;  %s2794_s5 = inlined_call_operand.vmem [shape: f32[8,384], index: 5, kind: input, shape index: {}]   ;;  %s2795_s6 = inlined_call_operand.vmem [shape: f32[8,384], index: 6, kind: input, shape index: {}]   ;;  %s2796_s7 = inlined_call_operand.hbm [shape: f32[64,384], index: 7, kind: output, shape index: {}]  }
   0x1   :  { %14 = vsyncpa [#allocation3 + $0x1], 0  ;;  %s2110_s24 = smov 0   ;;  %s2112_s25 = smov 0  }
   0x2   :  { %s2114_s26 = smov 0   ;;  %s2116_s27 = smov 0  }
   0x3 LB: > { %s2131_s28 = sadd.s32 4294967295, %s2064_s27   ;;  %s1461_s29 = sadd.s32 4294967294, %s2064_s27   ;;  %s2064_s27 = sphi %s2116_s27, %s2802_s27   ;;  %s2060_s26 = sphi %s2114_s26, %s2801_s26   ;;  %s2056_s25 = sphi %s2112_s25, %s2800_s25   ;;  %s2052_s24 = sphi %s2110_s24, %s2799_s24  }
   0x4   : > { %s2135_s30 = sadd.s32 1, %s2064_s27   ;;  %s179_s8 = sadd.s32 1, %s2060_s26 }
   0x5   : > { %s176_s9 = ssub.s32 %s2064_s27, %s2135_s30  ;;  %p189_p0 = scmp.ne.s32.totalorder %s2060_s26, %s2056_s25 }
   0x6   : > { %p177_p1 = scmp.eq.s32.totalorder %s176_s9, 0  ;;  %p190_p2 = scmp.eq.s32.totalorder %s2131_s28, 1 }
   0x7   : > { %p195_p3 = scmp.ne.s32.totalorder %s2056_s25, %s2052_s24  ;;  %p196_p4 = scmp.eq.s32.totalorder %s1461_s29, 1 }
   0x8   : > { %s2146_s10 = scalar_select %p177_p1, %s2060_s26, %s179_s8  }
   0x9   : > { %p2148_p5 = por %p190_p2, %p189_p0  ;;  %p2152_p6 = por %p196_p4, %p195_p3 }
   0xa   : > { %p1464_p7 = scmp.ge.s32.totalorder %s2064_s27, 1  ;;  %p241_p8 = scmp.lt.s32.totalorder %s2064_s27, 3 }
   0xc   : > { %p242_p9 = pnand %p1464_p7, %p241_p8 }
   0xd   : > { %v285_v0 = vld [vmem:[%s2790_s1 + $0x8] sm:$0xff] (!%p242_p9)  ;;  %v288_v1 = vld [vmem:[%s2790_s1 + $0x20] sm:$0xff] (!%p242_p9)  ;;  %v286_v2 = vld [vmem:[%s2790_s1 + $0x10] sm:$0xff] (!%p242_p9)  ;;  %s1465_s19 = sshll.u32 (!%p242_p9), %s2131_s28, 2  ;;  %v2066_v7 = vmov (!%p242_p9), 0.0   ;;  %vm337_vm0 = vcmask (!%p242_p9), 785408  }
   0xe   : > { %245 = sbr.rel (%p242_p9) target bundleno = 1177 (0x499), region = 48  ;;  %v1772_v3 = vpack.c.bf16 (!%p242_p9), %v288_v1, %v285_v0  ;;  %v289_v4 = vld [vmem:[%s2790_s1 + $0x28] sm:$0xff] (!%p242_p9)  ;;  %v284_v5 = vld [vmem:[%s2790_s1] sm:$0xff] (!%p242_p9)  ;;  %v287_v6 = vld [vmem:[%s2790_s1 + $0x18] sm:$0xff] (!%p242_p9)  ;;  %414 = vmatprep.mubr.f32.mxu0 (!%p242_p9), %v2066_v7  ;;  %p274_p10 = scmp.lt.s32.totalorder (!%p242_p9), %s1465_s19, 7  ;;  %vm749_vm1 = vcmask (!%p242_p9), 64512  }
   0xf   : > { %v1796_v8 = vpack.c.bf16 (!%p242_p9), %v289_v4, %v286_v2  ;;  %v1774_v9 = vpack.c.bf16 (!%p242_p9), %v287_v6, %v284_v5  ;;  %v291_v10 = vld [vmem:[%s2790_s1 + $0x38] sm:$0xff] (!%p242_p9)  ;;  %v294_v11 = vld [vmem:[%s2790_s1 + $0x50] sm:$0xff] (!%p242_p9)  ;;  %v292_v12 = vld [vmem:[%s2790_s1 + $0x40] sm:$0xff] (!%p242_p9)  ;;  %s1951_s16 = smul.u32 (!%p242_p9), 1536, %s2131_s28 }
  0x10   : > { %1773 = vmatprep.subr.bf16.mxu0 (!%p242_p9), %v1772_v3  ;;  %v1776_v13 = vpack.c.bf16 (!%p242_p9), %v294_v11, %v291_v10  ;;  %v295_v14 = vld [vmem:[%s2790_s1 + $0x58] sm:$0xff] (!%p242_p9)  ;;  %v290_v15 = vld [vmem:[%s2790_s1 + $0x30] sm:$0xff] (!%p242_p9)  ;;  %v293_v16 = vld [vmem:[%s2790_s1 + $0x48] sm:$0xff] (!%p242_p9) }
  0x11   : > { %1797 = vmatprep.subr.bf16.mxu1 (!%p242_p9), %v1796_v8  ;;  %1775 = vmatpush1.bf16.msra.mxu0 (!%p242_p9), %v1774_v9  ;;  %v1800_v17 = vpack.c.bf16 (!%p242_p9), %v295_v14, %v292_v12  ;;  %v1778_v18 = vpack.c.bf16 (!%p242_p9), %v293_v16, %v290_v15  ;;  %v297_v19 = vld [vmem:[%s2790_s1 + $0x68] sm:$0xff] (!%p242_p9)  ;;  %v300_v20 = vld [vmem:[%s2790_s1 + $0x80] sm:$0xff] (!%p242_p9)  ;;  %v298_v21 = vld [vmem:[%s2790_s1 + $0x70] sm:$0xff] (!%p242_p9)  ;;  %s2740_s21 = scalar_lea.hbm (!%p242_p9), %s2796_s7, %s1951_s16 }
  0x12   : > { %1799 = vmatpush3.bf16.msra.mxu1 (!%p242_p9), %v1796_v8  ;;  %1777 = vmatprep.subr.bf16.mxu0 (!%p242_p9), %v1776_v13  ;;  %v1780_v22 = vpack.c.bf16 (!%p242_p9), %v300_v20, %v297_v19  ;;  %v301_v23 = vld [vmem:[%s2790_s1 + $0x88] sm:$0xff] (!%p242_p9)  ;;  %v296_v24 = vld [vmem:[%s2790_s1 + $0x60] sm:$0xff] (!%p242_p9)  ;;  %v299_v25 = vld [vmem:[%s2790_s1 + $0x78] sm:$0xff] (!%p242_p9) }
  0x13   : > { %1801 = vmatprep.subr.bf16.mxu1 (!%p242_p9), %v1800_v17  ;;  %v1804_v26 = vpack.c.bf16 (!%p242_p9), %v301_v23, %v298_v21  ;;  %v303_v27 = vld [vmem:[%s2790_s1 + $0x98] sm:$0xff] (!%p242_p9)  ;;  %v306_v28 = vld [vmem:[%s2790_s1 + $0xb0] sm:$0xff] (!%p242_p9)  ;;  %v304_v29 = vld [vmem:[%s2790_s1 + $0xa0] sm:$0xff] (!%p242_p9)  ;;  %v1782_v31 = vpack.c.bf16 (!%p242_p9), %v299_v25, %v296_v24 }
  0x14   : > { %v307_v30 = vld [vmem:[%s2790_s1 + $0xb8] sm:$0xff] (!%p242_p9)  ;;  %v1784_v32 = vpack.c.bf16 (!%p242_p9), %v306_v28, %v303_v27  ;;  %v302_v33 = vld [vmem:[%s2790_s1 + $0x90] sm:$0xff] (!%p242_p9)  ;;  %v305_v34 = vld [vmem:[%s2790_s1 + $0xa8] sm:$0xff] (!%p242_p9) }
  0x15   : > { %s2804_s19 = smov (!%p274_p10, %s1465_s19), 7  ;;  %1779 = vmatpush1.bf16.msra.mxu0 %v1778_v18  ;;  %v1808_v35 = vpack.c.bf16 %v307_v30, %v304_v29  ;;  %v309_v36 = vld [vmem:[%s2790_s1 + $0xc8] sm:$0xff]  ;;  %v312_v37 = vld [vmem:[%s2790_s1 + $0xe0] sm:$0xff]  ;;  %v310_v38 = vld [vmem:[%s2790_s1 + $0xd0] sm:$0xff]  ;;  %v1786_v40 = vpack.c.bf16 %v305_v34, %v302_v33 }
  0x16   : > { %s1466_s14 = sshll.u32 %s2804_s19, 3  ;;  %1803 = vmatpush3.bf16.msra.mxu1 %v1800_v17  ;;  %1781 = vmatprep.subr.bf16.mxu0 %v1780_v22  ;;  %v313_v39 = vld [vmem:[%s2790_s1 + $0xe8] sm:$0xff]  ;;  %v1788_v42 = vpack.c.bf16 %v312_v37, %v309_v36  ;;  %v308_v43 = vld [vmem:[%s2790_s1 + $0xc0] sm:$0xff]  ;;  %v311_v44 = vld [vmem:[%s2790_s1 + $0xd8] sm:$0xff]  ;;  %s270_s19 = sand.u32 1, %s2056_s25  }
  0x17   : > { %s2238_s8 = scalar_lea.vmem %s2789_s0, %s1466_s14  ;;  %1805 = vmatprep.subr.bf16.mxu1 %v1804_v26  ;;  %v1812_v45 = vpack.c.bf16 %v313_v39, %v310_v38  ;;  %v315_v46 = vld [vmem:[%s2790_s1 + $0xf8] sm:$0xff]  ;;  %v318_v47 = vld [vmem:[%s2790_s1 + $0x110] sm:$0xff]  ;;  %v316_v48 = vld [vmem:[%s2790_s1 + $0x100] sm:$0xff]  ;;  %v1790_v50 = vpack.c.bf16 %v311_v44, %v308_v43  ;;  %s1950_s13 = smul.u32 96, %s270_s19 }
  0x18   : > { %v280_v41 = vld [vmem:[%s2238_s8] sm:$0xff]  ;;  %v319_v49 = vld [vmem:[%s2790_s1 + $0x118] sm:$0xff]  ;;  %v1792_v51 = vpack.c.bf16 %v318_v47, %v315_v46  ;;  %v314_v52 = vld [vmem:[%s2790_s1 + $0xf0] sm:$0xff]  ;;  %s2748_s28 = scalar_lea.sflag [#allocation3], %s270_s19  ;;  %s2067_s14 = smov [#allocation2]  }
  0x19   : > { %1783 = vmatpush1.bf16.msra.mxu0 %v1782_v31  ;;  %1674 = vmatprep.mubr.msk.f32.mxu1 %vm337_vm0, %v280_v41  ;;  %v317_v53 = vld [vmem:[%s2790_s1 + $0x108] sm:$0xff]  ;;  %v1816_v54 = vpack.c.bf16 %v319_v49, %v316_v48  ;;  %v540_v55 = vld [vmem:[%s2793_s4 + $0x80] sm:$0xff]  ;;  %v542_v0 = vld [vmem:[%s2793_s4 + $0x90] sm:$0xff]  ;;  %s2711_s15 = scalar_lea.vmem [#allocation2], %s1950_s13  ;;  %s2006_s22 = sshll.u32 %s2067_s14, 4  ;;  %s2007_s22 = int_to_ptr.vmem [resolvable:$false] %s2006_s22 }
  0x1a   : > { %1807 = vmatpush3.bf16.msra.mxu1 %v1804_v26  ;;  %1785 = vmatprep.subr.bf16.mxu0 %v1784_v32  ;;  %v541_v56 = vld [vmem:[%s2793_s4 + $0x88] sm:$0xff]  ;;  %v556_v57 = vld [vmem:[%s2793_s4 + $0x100] sm:$0xff]  ;;  %v1794_v59 = vpack.c.bf16 %v317_v53, %v314_v52  ;;  %v543_v1 = vld [vmem:[%s2793_s4 + $0x98] sm:$0xff]  ;;  %s1399_s17 = sshll.u32 %s2711_s15, 4  ;;  %s2008_s23 = scalar_lea.vmem %s2007_s22, 3072  ;;  %s2742_s17 = int_to_ptr.vmem [resolvable:$true] %s1399_s17 }
  0x1b   : > { %1809 = vmatprep.subr.bf16.mxu1 %v1808_v35  ;;  %v557_v58 = vld [vmem:[%s2793_s4 + $0x108] sm:$0xff]  ;;  %v2290_v60 = vpack.c.bf16 %v541_v56, %v540_v55  ;;  %v524_v62 = vld [vmem:[%s2793_s4] sm:$0xff]  ;;  %v558_v2 = vld [vmem:[%s2793_s4 + $0x110] sm:$0xff]  ;;  %v2318_v8 = vpack.c.bf16 %v543_v1, %v542_v0  ;;  %p2009_p0 = scmp.lt.s32.totalorder %s2742_s17, %s2007_s22 }
  0x1c   : > { %v2292_v61 = vpack.c.bf16 %v557_v58, %v556_v57  ;;  %v525_v63 = vld [vmem:[%s2793_s4 + $0x8] sm:$0xff]  ;;  %v559_v3 = vld [vmem:[%s2793_s4 + $0x118] sm:$0xff]  ;;  %v282_v6 = vld [vmem:[%s2238_s8 + $0x10] sm:$0xff] }
  0x1d   : > { %1787 = vmatpush1.bf16.msra.mxu0 %v1786_v40  ;;  %v281_v4 = vld [vmem:[%s2238_s8 + $0x8] sm:$0xff]  ;;  %v2314_v5 = vpack.c.bf16 %v525_v63, %v524_v62  ;;  %v526_v9 = vld [vmem:[%s2793_s4 + $0x10] sm:$0xff]  ;;  %v527_v10 = vld [vmem:[%s2793_s4 + $0x18] sm:$0xff]  ;;  %v2327_v11 = vpack.c.bf16 %v559_v3, %v558_v2 }
  0x1e   : > { %1811 = vmatpush3.bf16.msra.mxu1 %v1808_v35  ;;  %1789 = vmatprep.subr.bf16.mxu0 %v1788_v42  ;;  %v544_v12 = vld [vmem:[%s2793_s4 + $0xa0] sm:$0xff]  ;;  %v545_v13 = vld [vmem:[%s2793_s4 + $0xa8] sm:$0xff]  ;;  %v283_v16 = vld [vmem:[%s2238_s8 + $0x18] sm:$0xff]  ;;  %v2346_v17 = vpack.c.bf16 %v527_v10, %v526_v9  ;;  %v322_v10 = vlaneseq  ;;  %s2002_s8 = scalar_lea.vmem %s2742_s17, 1536 }
  0x1f   : > { %1813 = vmatprep.subr.bf16.mxu1 %v1812_v45  ;;  %v560_v14 = vld [vmem:[%s2793_s4 + $0x120] sm:$0xff]  ;;  %v561_v15 = vld [vmem:[%s2793_s4 + $0x128] sm:$0xff]  ;;  %v2350_v18 = vpack.c.bf16 %v545_v13, %v544_v12  ;;  %v546_v22 = vld [vmem:[%s2793_s4 + $0xb0] sm:$0xff]  ;;  %p2003_p11 = scmp.ne.s32.totalorder %s2742_s17, %s2002_s8  ;;  %p2010_p1 = scmp.lt.s32.totalorder %s2008_s23, %s2002_s8 }
  0x20   : > { %v528_v19 = vld [vmem:[%s2793_s4 + $0x20] sm:$0xff]  ;;  %v529_v20 = vld [vmem:[%s2793_s4 + $0x28] sm:$0xff]  ;;  %v2360_v21 = vpack.c.bf16 %v561_v15, %v560_v14  ;;  %v547_v23 = vld [vmem:[%s2793_s4 + $0xb8] sm:$0xff]  ;;  %v2518_v12 = vshrl.u32 %v322_v10, 7 }
  0x21   : > { %1791 = vmatpush1.bf16.msra.mxu0 %v1790_v50  ;;  %v562_v24 = vld [vmem:[%s2793_s4 + $0x130] sm:$0xff]  ;;  %v563_v25 = vld [vmem:[%s2793_s4 + $0x138] sm:$0xff]  ;;  %v2377_v26 = vpack.c.bf16 %v529_v20, %v528_v19  ;;  %v2381_v27 = vpack.c.bf16 %v547_v23, %v546_v22  ;;  %v548_v31 = vld [vmem:[%s2793_s4 + $0xc0] sm:$0xff]  ;;  %p2004_p12 = pnand %p2003_p11, %p2148_p5  ;;  %p2011_p2 = por %p2010_p1, %p2009_p0 }
  0x22   : > { %1815 = vmatpush3.bf16.msra.mxu1 %v1812_v45  ;;  %1793 = vmatprep.subr.bf16.mxu0 %v1792_v51  ;;  %v530_v28 = vld [vmem:[%s2793_s4 + $0x30] sm:$0xff]  ;;  %v531_v29 = vld [vmem:[%s2793_s4 + $0x38] sm:$0xff]  ;;  %v2391_v30 = vpack.c.bf16 %v563_v25, %v562_v24  ;;  %v549_v32 = vld [vmem:[%s2793_s4 + $0xc8] sm:$0xff]  ;;  %v332_v13 = vsub.s32 2, %v2518_v12  ;;  %v328_v14 = vsub.s32 1, %v2518_v12 }
  0x23   : > { %1817 = vmatprep.subr.bf16.mxu1 %v1816_v54  ;;  %v564_v33 = vld [vmem:[%s2793_s4 + $0x140] sm:$0xff]  ;;  %v565_v34 = vld [vmem:[%s2793_s4 + $0x148] sm:$0xff]  ;;  %v2407_v35 = vpack.c.bf16 %v531_v29, %v530_v28  ;;  %v2411_v36 = vpack.c.bf16 %v549_v32, %v548_v31  ;;  %v550_v40 = vld [vmem:[%s2793_s4 + $0xd0] sm:$0xff]  ;;  %p2005_p13 = pneg %p2004_p12 }
  0x24   : > { %v532_v37 = vld [vmem:[%s2793_s4 + $0x40] sm:$0xff]  ;;  %v533_v38 = vld [vmem:[%s2793_s4 + $0x48] sm:$0xff]  ;;  %v2421_v39 = vpack.c.bf16 %v565_v34, %v564_v33  ;;  %v566_v42 = vld [vmem:[%s2793_s4 + $0x150] sm:$0xff] }
  0x25   : > { %1795 = vmatpush1.bf16.msra.mxu0 %v1794_v59  ;;  %v567_v43 = vld [vmem:[%s2793_s4 + $0x158] sm:$0xff]  ;;  %v2436_v44 = vpack.c.bf16 %v533_v38, %v532_v37  ;;  %v534_v46 = vld [vmem:[%s2793_s4 + $0x50] sm:$0xff]  ;;  %v552_v49 = vld [vmem:[%s2793_s4 + $0xe0] sm:$0xff]  ;;  %p2012_p3 = pnand %p2011_p2, %p2005_p13 }
  0x26   : > { %1819 = vmatpush3.bf16.msra.mxu1 %v1816_v54  ;;  %1821 = vmatprep.subr.bf16.mxu0 %v2290_v60  ;;  %v535_v47 = vld [vmem:[%s2793_s4 + $0x58] sm:$0xff]  ;;  %v2449_v48 = vpack.c.bf16 %v567_v43, %v566_v42  ;;  %v553_v50 = vld [vmem:[%s2793_s4 + $0xe8] sm:$0xff]  ;;  %v568_v51 = vld [vmem:[%s2793_s4 + $0x160] sm:$0xff] }
  0x27   : > { %1853 = vmatprep.subr.bf16.mxu1 %v2292_v61  ;;  %v569_v52 = vld [vmem:[%s2793_s4 + $0x168] sm:$0xff]  ;;  %v2464_v53 = vpack.c.bf16 %v535_v47, %v534_v46  ;;  %v2468_v54 = vpack.c.bf16 %v553_v50, %v552_v49  ;;  %v536_v55 = vld [vmem:[%s2793_s4 + $0x60] sm:$0xff]  ;;  %v554_v59 = vld [vmem:[%s2793_s4 + $0xf0] sm:$0xff] }
  0x28   : > { %1467 = vmatmul.mubr.msk.f32.vlgmr.msra.gmra.mrb[0].mxu0 %vm337_vm0, %v280_v41  ;;  %v551_v41 = vld [vmem:[%s2793_s4 + $0xd8] sm:$0xff]  ;;  %v537_v56 = vld [vmem:[%s2793_s4 + $0x68] sm:$0xff]  ;;  %v2477_v57 = vpack.c.bf16 %v569_v52, %v568_v51  ;;  %v570_v63 = vld [vmem:[%s2793_s4 + $0x170] sm:$0xff] }
  0x29   : > { %1675 = vmatmul.mubr.msk.f32.vlgmr.msra.gmra.mrb[0].mxu1 %vm337_vm0, %v281_v4  ;;  %420 = vmatprep.mubr.f32.mxu0 %v2066_v7  ;;  %v2440_v45 = vpack.c.bf16 %v551_v41, %v550_v40  ;;  %v2480_v58 = vpack.c.bf16 %v537_v56, %v536_v55  ;;  %v555_v62 = vld [vmem:[%s2793_s4 + $0xf8] sm:$0xff]  ;;  %v538_v2 = vld [vmem:[%s2793_s4 + $0x70] sm:$0xff]  ;;  %v747_v9 = vld [vmem:[%s2794_s5 + $0x8] sm:$0xff] }
  0x2a   : > { %1677 = vmatprep.mubr.msk.f32.mxu1 %vm337_vm0, %v282_v6  ;;  %1823 = vmatpush3.bf16.msra.mxu0 %v2314_v5  ;;  %v2496_v0 = vpack.c.bf16 %v555_v62, %v554_v59  ;;  %v571_v1 = vld [vmem:[%s2793_s4 + $0x178] sm:$0xff]  ;;  %v320_v15 = vld [vmem:[%s2791_s2] sm:$0x7] }
  0x2b   : > { %1855 = vmatpush3.bf16.msra.mxu1 %v2292_v61  ;;  %1825 = vmatprep.subr.bf16.mxu0 %v2318_v8  ;;  %v539_v3 = vld [vmem:[%s2793_s4 + $0x78] sm:$0xff]  ;;  %v333_v19 = vrot.slane %v320_v15, %v332_v13  ;;  %v329_v20 = vrot.slane %v320_v15, %v328_v14  ;;  %v746_v62 = vld [vmem:[%s2794_s5] sm:$0xff] }
  0x2c   : > { %1468 = vmatmul.mubr.msk.f32.gmra.mrb[2].mxu0 %vm337_vm0, %v281_v4  ;;  %1857 = vmatprep.subr.bf16.mxu1 %v2327_v11  ;;  %v2507_v4 = vpack.c.bf16 %v571_v1, %v570_v63  ;;  %v748_v63 = vld [vmem:[%s2794_s5 + $0x10] sm:$0xff] }
  0x2d   : > { %426 = vmatprep.mubr.f32.mxu0 %v2066_v7  ;;  %1678 = vmatmul.mubr.msk.f32.gmra.mrb[2].mxu1 %vm337_vm0, %v283_v16 }
  0x2e   : > { %1827 = vmatpush3.bf16.msra.mxu0 %v2346_v17 }
  0x2f   : > { %1859 = vmatpush3.bf16.msra.mxu1 %v2327_v11  ;;  %1829 = vmatprep.subr.bf16.mxu0 %v2350_v18 }
  0x30   : > { %1469 = vmatmul.mubr.msk.f32.gmra.mrb[4].mxu0 %vm337_vm0, %v282_v6  ;;  %1861 = vmatprep.subr.bf16.mxu1 %v2360_v21  ;;  %v2509_v6 = vpack.c.bf16 %v539_v3, %v538_v2 }
  0x31   : > { %432 = vmatprep.mubr.f32.mxu0 %v2066_v7 }
  0x32   : > { %1831 = vmatpush3.bf16.msra.mxu0 %v2377_v26 }
  0x33   : > { %1863 = vmatpush3.bf16.msra.mxu1 %v2360_v21  ;;  %1833 = vmatprep.subr.bf16.mxu0 %v2381_v27 }
  0x34   : > { %1470 = vmatmul.mubr.msk.f32.gmra.mrb[6].mxu0 %vm337_vm0, %v283_v16  ;;  %1865 = vmatprep.subr.bf16.mxu1 %v2391_v30  ;;  %v324_v16 = vsub.s32 0, %v2518_v12 }
  0x36   : > { %1835 = vmatpush3.bf16.msra.mxu0 %v2407_v35  ;;  %v325_v22 = vrot.slane %v320_v15, %v324_v16 }
  0x37   : > { %1867 = vmatpush3.bf16.msra.mxu1 %v2391_v30  ;;  %1837 = vmatprep.subr.bf16.mxu0 %v2411_v36 }
  0x38   : > { %1869 = vmatprep.subr.bf16.mxu1 %v2421_v39 }
  0x3a   : > { %1839 = vmatpush3.bf16.msra.mxu0 %v2436_v44 }
  0x3b   : > { %1871 = vmatpush3.bf16.msra.mxu1 %v2421_v39  ;;  %1841 = vmatprep.subr.bf16.mxu0 %v2440_v45 }
  0x3c   : > { %1873 = vmatprep.subr.bf16.mxu1 %v2449_v48 }
  0x3e   : > { %1843 = vmatpush3.bf16.msra.mxu0 %v2464_v53 }
  0x3f   : > { %1875 = vmatpush3.bf16.msra.mxu1 %v2449_v48  ;;  %1845 = vmatprep.subr.bf16.mxu0 %v2468_v54 }
  0x40   : > { %1877 = vmatprep.subr.bf16.mxu1 %v2477_v57 }
  0x42   : > { %1847 = vmatpush3.bf16.msra.mxu0 %v2480_v58 }
  0x43   : > { %1879 = vmatpush3.bf16.msra.mxu1 %v2477_v57  ;;  %1849 = vmatprep.subr.bf16.mxu0 %v2496_v0 }
  0x44   : > { %1881 = vmatprep.subr.bf16.mxu1 %v2507_v4 }
  0x46   : > { %1851 = vmatpush3.bf16.msra.mxu0 %v2509_v6 }
  0x47   : > { %1883 = vmatpush3.bf16.msra.mxu1 %v2507_v4  ;;  %1718 = vmatprep.subr.mxu0 %v748_v63 }
  0x48   : > { %762 = vmatprep.subr.mxu1 %v747_v9 }
  0xfb   : > { %v416_v23 = vpop.f32.mrb[0].mxu0 }
  0xfc   : > { %v1676_v24 = vpop.f32.mrb[0].mxu1  ;;  %v418_v25 = vpop.f32.mrb[1].mxu0  ;;  %v2536_v32 = vadd.f32 %v416_v23, %v325_v22 }
  0xfd   : > { %v2532_v28 = vadd.f32 %v1676_v24, %v333_v19  ;;  %v2534_v29 = vadd.f32 %v418_v25, %v329_v20  ;;  %v505_v31 = vpop.f32.mrb[1].mxu1 }
  0xfe   : > { %v2538_v33 = vadd.f32 %v505_v31, %v333_v19 }
  0xff   : > { %v422_v34 = vpop.f32.mrb[2].mxu0  ;;  %636 = vmatprep.mubr.f32.mxu0 %v2534_v29 }
 0x100   : > { %1712 = vmatprep.mubr.f32.mxu1 %v2538_v33  ;;  %v424_v37 = vpop.f32.mrb[3].mxu0  ;;  %637 = vmatmul.mubr.f32.vlgmr.msra.gmra.mrb[8].mxu0 %v2536_v32  ;;  %v1679_v38 = vpop.f32.mrb[2].mxu1  ;;  %v2548_v43 = vadd.f32 %v422_v34, %v325_v22 }
 0x101   : > { %v2543_v40 = vadd.f32 %v424_v37, %v329_v20  ;;  %1713 = vmatmul.mubr.f32.vlgmr.msra.gmra.mrb[4].mxu1 %v2532_v28  ;;  %v2546_v41 = vadd.f32 %v1679_v38, %v333_v19  ;;  %v515_v42 = vpop.f32.mrb[3].mxu1  ;;  %1719 = vmatpush3.msra.mxu0 %v748_v63 }
 0x102   : > { %v2550_v46 = vadd.f32 %v515_v42, %v333_v19  ;;  %763 = vmatpush1.msra.mxu1 %v746_v62  ;;  %1917 = vmatprep.subr.bf16.mxu0 %v2292_v61 }
 0x103   : > { %v428_v47 = vpop.f32.mrb[4].mxu0  ;;  %641 = vmatprep.mubr.f32.mxu0 %v2543_v40  ;;  %1885 = vmatprep.subr.bf16.mxu1 %v2290_v60 }
 0x104   : > { %v430_v49 = vpop.f32.mrb[5].mxu0  ;;  %642 = vmatmul.mubr.f32.gmra.mrb[10].mxu0 %v2548_v43  ;;  %1715 = vmatprep.mubr.f32.mxu1 %v2550_v46  ;;  %v2558_v51 = vadd.f32 %v428_v47, %v325_v22 }
 0x105   : > { %v2555_v50 = vadd.f32 %v430_v49, %v329_v20  ;;  %1716 = vmatmul.mubr.f32.gmra.mrb[6].mxu1 %v2546_v41 }
 0x106   : > { %826 = vmatprep.mubr.f32.mxu1 %v2066_v7 }
 0x107   : > { %v434_v52 = vpop.f32.mrb[6].mxu0  ;;  %646 = vmatprep.mubr.f32.mxu0 %v2555_v50 }
 0x108   : > { %v436_v55 = vpop.f32.mrb[7].mxu0  ;;  %647 = vmatmul.mubr.f32.gmra.mrb[12].mxu0 %v2558_v51  ;;  %v2565_v59 = vadd.f32 %v434_v52, %v325_v22 }
 0x109   : > { %v2563_v56 = vadd.f32 %v436_v55, %v329_v20 }
 0x10b   : > { %651 = vmatprep.mubr.f32.mxu0 %v2563_v56 }
 0x10c   : > { %652 = vmatmul.mubr.f32.gmra.mrb[14].mxu0 %v2565_v59 }
 0x1d3   : > { %v1544_v1 = vpop.f32.mrb[8].mxu0 }
 0x1d4   : > { %v1714_v2 = vpop.f32.mrb[4].mxu1  ;;  %v1545_v3 = vpop.f32.mrb[9].mxu0 }
 0x1d5   : > { %v1546_v9 = vadd.f32 %v1545_v3, %v1544_v1  ;;  %v723_v10 = vpop.f32.mrb[5].mxu1 }
 0x1d7   : > { %v724_v15 = vadd.f32 %v1546_v9, %v723_v10  ;;  %v1547_v19 = vpop.f32.mrb[10].mxu0  ;;  %v1144_v9 = vld [vmem:[%s2795_s6 + $0x10] sm:$0xff] }
 0x1d8   : > { %v1548_v20 = vpop.f32.mrb[11].mxu0  ;;  %v1717_v22 = vpop.f32.mrb[6].mxu1 }
 0x1d9   : > { %v742_v23 = vmul.f32 0.020833334, %v724_v15  ;;  %v1549_v60 = vadd.f32 %v1548_v20, %v1547_v19  ;;  %v733_v24 = vpop.f32.mrb[7].mxu1 }
 0x1db   : > { %v729_v25 = vadd.f32 %v1714_v2, %v1549_v60  ;;  %v1550_v31 = vpop.f32.mrb[12].mxu0  ;;  %1475 = vmatmul.mubr.msk.f32.vlgmr.msra.gmra.mrb[8].mxu1 %vm749_vm1, %v742_v23  ;;  %1720 = vmatprep.mubr.msk.f32.mxu0 %vm749_vm1, %v742_v23 }
 0x1dc   : > { %v1551_v34 = vpop.f32.mrb[13].mxu0  ;;  %832 = vmatprep.mubr.f32.mxu1 %v2066_v7  ;;  %1887 = vmatpush3.bf16.msra.mxu1 %v2314_v5 }
 0x1dd   : > { %v743_v37 = vmul.f32 0.020833334, %v729_v25  ;;  %v1552_v38 = vadd.f32 %v1551_v34, %v1550_v31  ;;  %1889 = vmatprep.subr.bf16.mxu1 %v2318_v8 }
 0x1df   : > { %v734_v42 = vadd.f32 %v1552_v38, %v733_v24  ;;  %v1553_v47 = vpop.f32.mrb[14].mxu0  ;;  %1476 = vmatmul.mubr.msk.f32.gmra.mrb[10].mxu1 %vm749_vm1, %v743_v37  ;;  %1721 = vmatmul.mubr.msk.f32.vlgmr.msra.gmra.mrb[16].mxu0 %vm749_vm1, %v743_v37 }
 0x1e0   : > { %v1554_v49 = vpop.f32.mrb[15].mxu0  ;;  %838 = vmatprep.mubr.f32.mxu1 %v2066_v7  ;;  %1891 = vmatpush3.bf16.msra.mxu1 %v2346_v17 }
 0x1e1   : > { %v744_v52 = vmul.f32 0.020833334, %v734_v42  ;;  %v1555_v55 = vadd.f32 %v1554_v49, %v1553_v47  ;;  %1919 = vmatpush3.bf16.msra.mxu0 %v2292_v61  ;;  %1893 = vmatprep.subr.bf16.mxu1 %v2350_v18 }
 0x1e2   : > { %1921 = vmatprep.subr.bf16.mxu0 %v2327_v11 }
 0x1e3   : > { %v739_v5 = vadd.f32 %v1717_v22, %v1555_v55  ;;  %1477 = vmatmul.mubr.msk.f32.gmra.mrb[12].mxu1 %vm749_vm1, %v744_v52  ;;  %1723 = vmatprep.mubr.msk.f32.mxu0 %vm749_vm1, %v744_v52 }
 0x1e4   : > { %844 = vmatprep.mubr.f32.mxu1 %v2066_v7  ;;  %1895 = vmatpush3.bf16.msra.mxu1 %v2377_v26 }
 0x1e5   : > { %v745_v8 = vmul.f32 0.020833334, %v739_v5  ;;  %1923 = vmatpush3.bf16.msra.mxu0 %v2327_v11  ;;  %1897 = vmatprep.subr.bf16.mxu1 %v2381_v27 }
 0x1e6   : > { %1925 = vmatprep.subr.bf16.mxu0 %v2360_v21 }
 0x1e7   : > { %1478 = vmatmul.mubr.msk.f32.gmra.mrb[14].mxu1 %vm749_vm1, %v745_v8  ;;  %1724 = vmatmul.mubr.msk.f32.gmra.mrb[18].mxu0 %vm749_vm1, %v745_v8 }
 0x1e8   : > { %1899 = vmatpush3.bf16.msra.mxu1 %v2407_v35 }
 0x1e9   : > { %1927 = vmatpush3.bf16.msra.mxu0 %v2360_v21  ;;  %1901 = vmatprep.subr.bf16.mxu1 %v2411_v36 }
 0x1ea   : > { %1929 = vmatprep.subr.bf16.mxu0 %v2391_v30 }
 0x1ec   : > { %1903 = vmatpush3.bf16.msra.mxu1 %v2436_v44 }
 0x1ed   : > { %1931 = vmatpush3.bf16.msra.mxu0 %v2391_v30  ;;  %1905 = vmatprep.subr.bf16.mxu1 %v2440_v45 }
 0x1ee   : > { %1933 = vmatprep.subr.bf16.mxu0 %v2421_v39 }
 0x1f0   : > { %1907 = vmatpush3.bf16.msra.mxu1 %v2464_v53 }
 0x1f1   : > { %1935 = vmatpush3.bf16.msra.mxu0 %v2421_v39  ;;  %1909 = vmatprep.subr.bf16.mxu1 %v2468_v54 }
 0x1f2   : > { %1937 = vmatprep.subr.bf16.mxu0 %v2449_v48 }
 0x1f4   : > { %1911 = vmatpush3.bf16.msra.mxu1 %v2480_v58 }
 0x1f5   : > { %1939 = vmatpush3.bf16.msra.mxu0 %v2449_v48  ;;  %1913 = vmatprep.subr.bf16.mxu1 %v2496_v0 }
 0x1f6   : > { %1941 = vmatprep.subr.bf16.mxu0 %v2477_v57 }
 0x1f8   : > { %1915 = vmatpush3.bf16.msra.mxu1 %v2509_v6 }
 0x1f9   : > { %1943 = vmatpush3.bf16.msra.mxu0 %v2477_v57 }
 0x1fa   : > { %1945 = vmatprep.subr.bf16.mxu0 %v2507_v4 }
 0x1fd   : > { %1947 = vmatpush3.bf16.msra.mxu0 %v2507_v4 }
 0x2ae   : > { %v828_v61 = vpop.f32.mrb[8].mxu1 }
 0x2af   : > { %v2619_v11 = vsub.f32 %v2536_v32, %v828_v61  ;;  %v830_v17 = vpop.f32.mrb[9].mxu1 }
 0x2b0   : > { %v2622_v18 = vsub.f32 %v2534_v29, %v830_v17 }
 0x2b1   : > { %v948_v30 = vmul.f32 %v2619_v11, %v2619_v11 }
 0x2b2   : > { %v949_v21 = vmul.f32 %v2622_v18, %v2622_v18  ;;  %v834_v26 = vpop.f32.mrb[10].mxu1  ;;  %v1722_v27 = vpop.f32.mrb[16].mxu0 }
 0x2b3   : > { %v2629_v35 = vsub.f32 %v2548_v43, %v834_v26  ;;  %v2632_v36 = vsub.f32 %v2532_v28, %v1722_v27  ;;  %v836_v39 = vpop.f32.mrb[11].mxu1  ;;  %v917_v44 = vpop.f32.mrb[17].mxu0 }
 0x2b4   : > { %v2635_v45 = vsub.f32 %v2543_v40, %v836_v39  ;;  %v2638_v48 = vsub.f32 %v2538_v33, %v917_v44  ;;  %1024 = vmatprep.mubr.f32.mxu1 %v949_v21 }
 0x2b5   : > { %1025 = vmatmul.mubr.f32.vlgmr.msra.gmra.mrb[16].mxu1 %v948_v30  ;;  %v951_v58 = vmul.f32 %v2629_v35, %v2629_v35  ;;  %v953_v0 = vmul.f32 %v2632_v36, %v2632_v36 }
 0x2b6   : > { %v952_v53 = vmul.f32 %v2635_v45, %v2635_v45  ;;  %v950_v54 = vmul.f32 %v2638_v48, %v2638_v48  ;;  %v840_v57 = vpop.f32.mrb[12].mxu1 }
 0x2b7   : > { %v2649_v4 = vsub.f32 %v2558_v51, %v840_v57  ;;  %v842_v6 = vpop.f32.mrb[13].mxu1 }
 0x2b8   : > { %v2652_v28 = vsub.f32 %v2555_v50, %v842_v6  ;;  %1029 = vmatprep.mubr.f32.mxu1 %v952_v53  ;;  %1758 = vmatprep.mubr.f32.mxu0 %v950_v54 }
 0x2b9   : > { %1030 = vmatmul.mubr.f32.gmra.mrb[18].mxu1 %v951_v58  ;;  %1759 = vmatmul.mubr.f32.vlgmr.msra.gmra.mrb[20].mxu0 %v953_v0  ;;  %v954_v40 = vmul.f32 %v2649_v4, %v2649_v4 }
 0x2ba   : > { %v955_v29 = vmul.f32 %v2652_v28, %v2652_v28  ;;  %v846_v32 = vpop.f32.mrb[14].mxu1  ;;  %v1725_v33 = vpop.f32.mrb[18].mxu0 }
 0x2bb   : > { %v2659_v43 = vsub.f32 %v2565_v59, %v846_v32  ;;  %v2662_v51 = vsub.f32 %v2546_v41, %v1725_v33  ;;  %v848_v50 = vpop.f32.mrb[15].mxu1  ;;  %v927_v62 = vpop.f32.mrb[19].mxu0 }
 0x2bc   : > { %v2665_v63 = vsub.f32 %v2563_v56, %v848_v50  ;;  %v2668_v1 = vsub.f32 %v2550_v46, %v927_v62  ;;  %1034 = vmatprep.mubr.f32.mxu1 %v955_v29  ;;  %v1143_v46 = vld [vmem:[%s2795_s6 + $0x8] sm:$0xff]  ;;  %v1142_v56 = vld [vmem:[%s2795_s6] sm:$0xff] }
 0x2bd   : > { %1035 = vmatmul.mubr.f32.gmra.mrb[20].mxu1 %v954_v40  ;;  %v957_v41 = vmul.f32 %v2659_v43, %v2659_v43  ;;  %v959_v3 = vmul.f32 %v2662_v51, %v2662_v51  ;;  %1948 = vmatprep.subr.mxu1 %v1143_v46 }
 0x2be   : > { %v958_v2 = vmul.f32 %v2665_v63, %v2665_v63  ;;  %v956_v59 = vmul.f32 %v2668_v1, %v2668_v1  ;;  %1157 = vmatprep.subr.mxu0 %v1143_v46  ;;  %1949 = vmatpush1.msra.mxu1 %v1142_v56 }
 0x2bf   : > { %1158 = vmatpush1.msra.mxu0 %v1142_v56  ;;  %1764 = vmatprep.subr.mxu1 %v1144_v9 }
 0x2c0   : > { %1039 = vmatprep.mubr.f32.mxu1 %v958_v2  ;;  %1761 = vmatprep.mubr.f32.mxu0 %v956_v59 }
 0x2c1   : > { %1040 = vmatmul.mubr.f32.gmra.mrb[22].mxu1 %v957_v41  ;;  %1762 = vmatmul.mubr.f32.gmra.mrb[22].mxu0 %v959_v3 }
 0x2c2   : > { %1221 = vmatprep.mubr.f32.mxu0 %v2066_v7  ;;  %1239 = vmatprep.mubr.f32.mxu1 %v2066_v7 }
 0x388   : > { %v1613_v10 = vpop.f32.mrb[16].mxu1 }
 0x389   : > { %v1614_v15 = vpop.f32.mrb[17].mxu1 }
 0x38a   : > { %v1615_v19 = vadd.f32 %v1614_v15, %v1613_v10 }
 0x38c   : > { %v1616_v20 = vpop.f32.mrb[18].mxu1  ;;  %v1760_v22 = vpop.f32.mrb[20].mxu0 }
 0x38d   : > { %v1617_v23 = vpop.f32.mrb[19].mxu1  ;;  %v1111_v60 = vpop.f32.mrb[21].mxu0 }
 0x38e   : > { %v1618_v24 = vadd.f32 %v1617_v23, %v1616_v20  ;;  %v1112_v25 = vadd.f32 %v1615_v19, %v1111_v60 }
 0x390   : > { %v1117_v31 = vadd.f32 %v1760_v22, %v1618_v24  ;;  %v1130_v34 = vmul.f32 0.020833334, %v1112_v25  ;;  %v1619_v37 = vpop.f32.mrb[20].mxu1 }
 0x391   : > { %v1620_v38 = vpop.f32.mrb[21].mxu1 }
 0x392   : > { %v1131_v42 = vmul.f32 0.020833334, %v1117_v31  ;;  %v1134_v47 = vadd.f32 1e-05, %v1130_v34  ;;  %v1621_v49 = vadd.f32 %v1620_v38, %v1619_v37 }
 0x394   : > { %v1135_v52 = vadd.f32 1e-05, %v1131_v42  ;;  %1994 = vrsqrt.f32 %v1134_v47  ;;  %v1622_v55 = vpop.f32.mrb[22].mxu1  ;;  %v1763_v5 = vpop.f32.mrb[22].mxu0 }
 0x395   : > { %v1623_v8 = vpop.f32.mrb[23].mxu1  ;;  %v1121_v61 = vpop.f32.mrb[23].mxu0 }
 0x396   : > { %v1624_v17 = vadd.f32 %v1623_v8, %v1622_v55  ;;  %v1122_v21 = vadd.f32 %v1621_v49, %v1121_v61  ;;  %1996 = vrsqrt.f32 %v1135_v52 }
 0x398   : > { %v1127_v26 = vadd.f32 %v1763_v5, %v1624_v17  ;;  %v1132_v27 = vmul.f32 0.020833334, %v1122_v21 }
 0x39a   : > { %v1133_v30 = vmul.f32 0.020833334, %v1127_v26  ;;  %v1136_v39 = vadd.f32 1e-05, %v1132_v27 }
 0x39c   : > { %v1137_v44 = vadd.f32 1e-05, %v1133_v30  ;;  %1998 = vrsqrt.f32 %v1136_v39 }
 0x39e   : > { %v1995_v53 = vpop.eup %1994  ;;  %2000 = vrsqrt.f32 %v1137_v44 }
 0x39f   : > { %1483 = vmatmul.mubr.msk.f32.vlgmr.msra.gmra.mrb[24].mxu0 %vm749_vm1, %v1995_v53 }
 0x3a0   : > { %1227 = vmatprep.mubr.f32.mxu0 %v2066_v7  ;;  %v1997_v54 = vpop.eup %1996 }
 0x3a3   : > { %1484 = vmatmul.mubr.msk.f32.gmra.mrb[26].mxu0 %vm749_vm1, %v1997_v54 }
 0x3a4   : > { %1233 = vmatprep.mubr.f32.mxu0 %v2066_v7  ;;  %v1343_v7 = vld [vmem:[%s2792_s3] sm:$0x7] }
 0x3a5   : > { %v1348_v0 = vrot.slane %v1343_v7, %v324_v16  ;;  %v1352_v29 = vrot.slane %v1343_v7, %v328_v14 }
 0x3a6   : > { %v1999_v57 = vpop.eup %1998 }
 0x3a7   : > { %1485 = vmatmul.mubr.msk.f32.gmra.mrb[28].mxu0 %vm749_vm1, %v1999_v57 }
 0x3a8   : > { %v2001_v58 = vpop.eup %2000 }
 0x3a9   : > { %1486 = vmatmul.mubr.msk.f32.vlgmr.msra.gmra.mrb[24].mxu1 %vm749_vm1, %v2001_v58 }
 0x3aa   : > { %1765 = vmatpush3.msra.mxu1 %v1144_v9  ;;  %1766 = vmatprep.mubr.msk.f32.mxu1 %vm749_vm1, %v1995_v53 }
 0x3ad   : > { %1767 = vmatmul.mubr.msk.f32.vlgmr.msra.gmra.mrb[26].mxu1 %vm749_vm1, %v1997_v54 }
 0x3ae   : > { %1769 = vmatprep.mubr.msk.f32.mxu1 %vm749_vm1, %v1999_v57 }
 0x3b1   : > { %1770 = vmatmul.mubr.msk.f32.gmra.mrb[28].mxu1 %vm749_vm1, %v2001_v58 }
 0x472   : > { %v1223_v6 = vpop.f32.mrb[24].mxu0 }
 0x473   : > { %v1331_v32 = vmul.f32 %v1223_v6, %v2619_v11  ;;  %v1225_v33 = vpop.f32.mrb[25].mxu0 }
 0x474   : > { %v1332_v40 = vmul.f32 %v1225_v33, %v2622_v18 }
 0x475   : > { %v1360_v50 = vadd.f32 %v1348_v0, %v1331_v32 }
 0x476   : > { %v1361_v62 = vadd.f32 %v1352_v29, %v1332_v40  ;;  %v1229_v2 = vpop.f32.mrb[26].mxu0 }
 0x477   : > { %1372 = vst [vmem:[%s2711_s15] sm:$0xff] %v1360_v50  ;;  %v1334_v16 = vmul.f32 %v1229_v2, %v2629_v35  ;;  %v1231_v59 = vpop.f32.mrb[27].mxu0 }
 0x478   : > { %1373 = vst [vmem:[%s2711_s15 + $0x8] sm:$0xff] %v1361_v62  ;;  %v1335_v14 = vmul.f32 %v1231_v59, %v2635_v45 }
 0x479   : > { %v1363_v11 = vadd.f32 %v1348_v0, %v1334_v16 }
 0x47a   : > { %v1364_v41 = vadd.f32 %v1352_v29, %v1335_v14  ;;  %v1235_v18 = vpop.f32.mrb[28].mxu0 }
 0x47b   : > { %1375 = vst [vmem:[%s2711_s15 + $0x18] sm:$0xff] %v1363_v11  ;;  %v1337_v3 = vmul.f32 %v1235_v18, %v2649_v4  ;;  %v1237_v46 = vpop.f32.mrb[29].mxu0  ;;  %v1356_v4 = vrot.slane %v1343_v7, %v332_v13 }
 0x47c   : > { %1376 = vst [vmem:[%s2711_s15 + $0x20] sm:$0xff] %v1364_v41  ;;  %v1338_v56 = vmul.f32 %v1237_v46, %v2652_v28  ;;  %v1241_v9 = vpop.f32.mrb[24].mxu1 }
 0x47d   : > { %v1366_v35 = vadd.f32 %v1348_v0, %v1337_v3  ;;  %v1340_v10 = vmul.f32 %v1241_v9, %v2659_v43  ;;  %v1243_v15 = vpop.f32.mrb[25].mxu1 }
 0x47e   : > { %v1367_v45 = vadd.f32 %v1352_v29, %v1338_v56  ;;  %v1341_v19 = vmul.f32 %v1243_v15, %v2665_v63 }
 0x47f   : > { %1378 = vst [vmem:[%s2711_s15 + $0x30] sm:$0xff] %v1366_v35  ;;  %v1369_v20 = vadd.f32 %v1348_v0, %v1340_v10 }
 0x480   : > { %1379 = vst [vmem:[%s2711_s15 + $0x38] sm:$0xff] %v1367_v45  ;;  %v1370_v28 = vadd.f32 %v1352_v29, %v1341_v19  ;;  %v1768_v22 = vpop.f32.mrb[26].mxu1 }
 0x481   : > { %1381 = vst [vmem:[%s2711_s15 + $0x48] sm:$0xff] %v1369_v20  ;;  %v1336_v23 = vmul.f32 %v1768_v22, %v2632_v36  ;;  %v1312_v43 = vpop.f32.mrb[27].mxu1 }
 0x482   : > { %1382 = vst [vmem:[%s2711_s15 + $0x50] sm:$0xff] %v1370_v28  ;;  %v1333_v60 = vmul.f32 %v1312_v43, %v2638_v48 }
 0x483   : > { %v1365_v63 = vadd.f32 %v1356_v4, %v1336_v23 }
 0x484   : > { %v1362_v24 = vadd.f32 %v1356_v4, %v1333_v60  ;;  %v1771_v12 = vpop.f32.mrb[28].mxu1 }
 0x485   : > { %1377 = vst [vmem:[%s2711_s15 + $0x28] sm:$0xff] %v1365_v63  ;;  %v1342_v13 = vmul.f32 %v1771_v12, %v2662_v51  ;;  %v1322_v25 = vpop.f32.mrb[29].mxu1 }
 0x486   : > { %1374 = vst [vmem:[%s2711_s15 + $0x10] sm:$0xff] %v1362_v24  ;;  %v1339_v36 = vmul.f32 %v1322_v25, %v2668_v1 }
 0x487   : > { %v1371_v31 = vadd.f32 %v1356_v4, %v1342_v13 }
 0x488   : > { %v1368_v48 = vadd.f32 %v1356_v4, %v1339_v36 }
 0x489   : > { %1383 = vst [vmem:[%s2711_s15 + $0x58] sm:$0xff] %v1371_v31 }
 0x48a   : > { %1380 = vst [vmem:[%s2711_s15 + $0x40] sm:$0xff] %v1368_v48 }
 0x48b   : > { %2015 = shalt.err (!%p2012_p3)
}
 0x48c   : > { %s2016_s19 = scalar_lea.hbm %s2740_s21, 1536  ;;  %s2020_s13 = scalar_lea.hbm %s2796_s7, 3072 }
 0x48d   : > { %p2017_p4 = scmp.ne.s32.totalorder %s2740_s21, %s2016_s19  ;;  %p2021_p9 = scmp.lt.u32.totalorder %s2740_s21, %s2796_s7 }
 0x48e   : > { %p2022_p10 = scmp.lt.u32.totalorder %s2020_s13, %s2016_s19  ;;  %p2024_p12 = scmp.lt.u32.totalorder %s2016_s19, %s2740_s21 }
 0x48f   : > { %p2018_p7 = pnand %p2017_p4, %p2148_p5 }
 0x490   : > { %p2023_p11 = por %p2022_p10, %p2021_p9 }
 0x491   : > { %p2019_p8 = pneg %p2018_p7 }
 0x492   : > { %p2025_p13 = por %p2024_p12, %p2023_p11 }
 0x494   : > { %p2026_p0 = pnand %p2025_p13, %p2019_p8 }
 0x496   : > { %2029 = shalt.err (!%p2026_p0)
}
 0x497   : > { %s2068_s18 = smov 384   ;;  %s2069_s20 = smov 24  }
 0x498   : > { %1952 = dma.vmem_to_hbm [thread:$0]  (%p2148_p5), %s2742_s17, 1536, %s2740_s21, %s2748_s28, %s2068_s18, %s2068_s18, %s2069_s20  }
 0x499 PF: > { %p1958_p1 = scmp.ge.s32.totalorder %s2064_s27, 2  ;;  %s1414_s8 = sand.u32 1, %s2052_s24  }
 0x49a   : > { %s1415_s14 = scalar_lea.sflag [#allocation3], %s1414_s8 }
 0x49b   : > { %p1955_p2 = pnand %p1958_p1, %p2152_p6 }
 0x49d   : > { %2047 = dma.done.wait (!%p1955_p2), %s1415_s14, 1536  }
 0x49e   : > { %2049 = vsyncadd (!%p1955_p2), %s1415_s14, 4294965760  ;;  %p17_p3 = scmp.ge.s32.totalorder %s2135_s30, 4   ;;  %s2799_s24 = smov %s2056_s25 }
 0x49f   : > { %s2800_s25 = smov %s2060_s26  ;;  %s2801_s26 = smov %s2146_s10 }
 0x4a0   : > { %s2802_s27 = smov %s2135_s30  ;;  %19 = sbr.rel (!%p17_p3) target bundleno = 3 (0x3), region = 83 }
 0x4a7   :  { %1420 = vsyncpa [#allocation3], 1 }
 0x4a8   :  { %1422 = vsyncpa [#allocation3 + $0x1], 1 }

</bundles_post_ra>
